<compile_context>
chip_gen: v7x
topology: tpu7x:2x2x1
jax: 0.10.0
libtpu: 0.0.40
codegen_flags: <defaults>
</compile_context>

<pallas_src>
import jax
import jax.numpy as jnp
from jax.experimental import pallas as pl
from jax.experimental.pallas import tpu as pltpu

_D_PAD = 8      # layer-1 contraction dim padded to one sublane group
_H_PAD = 128    # hidden / output lane width (lane-dense)
_TB_MAX = 512   # max rows per batch tile


def _mlp_kernel(x_ref, w1_ref, w23_ref, b_ref, o_ref):
    # Layer 1: (TB, 8) @ (8, 128) + b1 -> ReLU
    h1 = jnp.dot(x_ref[...], w1_ref[...], preferred_element_type=jnp.float32)
    h1 = jnp.maximum(h1 + b_ref[0:1, :], 0.0)
    # Layer 2: (TB, 128) @ (128, 128) + b2 -> ReLU   (lane-aligned static slice of [W2|W3])
    h2 = jnp.dot(h1, w23_ref[:, 0:_H_PAD], preferred_element_type=jnp.float32)
    h2 = jnp.maximum(h2 + b_ref[1:2, :], 0.0)
    # Layer 3: (TB, 128) @ (128, 128) + b3           (no activation)
    out = jnp.dot(h2, w23_ref[:, _H_PAD:2 * _H_PAD], preferred_element_type=jnp.float32)
    o_ref[...] = (out + b_ref[2:3, :]).astype(o_ref.dtype)


def _pad2(x, rows, cols):
    r, c = x.shape
    return jnp.pad(x, ((0, rows - r), (0, cols - c)))


def prepare_params(params):
    """Pad/pack parameters ONCE into TPU-tile-friendly arrays.

    Returns (w1_p, w23_p, b_p):
      w1_p : (8, 128)    -- W1 zero-padded (D=4 -> 8 sublanes, H=10 -> 128 lanes)
      w23_p: (128, 256)  -- [W2 | W3], each zero-padded to (128, 128)
      b_p  : (8, 128)    -- row 0 = b1, row 1 = b2, row 2 = b3 (lane 0), rest zero
    """
    (w1, b1), (w2, b2), (w3, b3) = params
    w1_p = _pad2(w1, _D_PAD, _H_PAD)
    w2_p = _pad2(w2, _H_PAD, _H_PAD)
    w3_p = _pad2(w3, _H_PAD, _H_PAD)
    w23_p = jnp.concatenate([w2_p, w3_p], axis=1)          # (128, 256)
    b_p = jnp.zeros((8, _H_PAD), jnp.float32)
    b_p = b_p.at[0, : b1.shape[0]].set(b1)
    b_p = b_p.at[1, : b2.shape[0]].set(b2)
    b_p = b_p.at[2, : b3.shape[0]].set(b3)
    return w1_p, w23_p, b_p


@jax.jit
def network_forward(x, padded_params):
    """Forward pass of the 3-layer value network. x: (B, state_dim) float32 -> (B, 1)."""
    w1_p, w23_p, b_p = padded_params
    B, D = x.shape

    # Choose batch tile: whole (padded) batch if small, else 512-row tiles.
    if B <= _TB_MAX:
        tb = max(8, ((B + 7) // 8) * 8)
    else:
        tb = _TB_MAX
    Bp = ((B + tb - 1) // tb) * tb

    # Only x is padded in the hot path (params were padded once in prepare_params).
    x_p = jnp.pad(x, ((0, Bp - B), (0, _D_PAD - D)))

    out_p = pl.pallas_call(
        _mlp_kernel,
        out_shape=jax.ShapeDtypeStruct((Bp, _H_PAD), jnp.float32),
        grid_spec=pltpu.PrefetchScalarGridSpec(
            num_scalar_prefetch=0,
            grid=(Bp // tb,),
            in_specs=[
                pl.BlockSpec((tb, _D_PAD), lambda i: (i, 0)),          # x tile (pipelined)
                pl.BlockSpec((_D_PAD, _H_PAD), lambda i: (0, 0)),      # W1 (VMEM-resident)
                pl.BlockSpec((_H_PAD, 2 * _H_PAD), lambda i: (0, 0)),  # [W2|W3] (resident)
                pl.BlockSpec((8, _H_PAD), lambda i: (0, 0)),           # packed biases
            ],
            out_specs=pl.BlockSpec((tb, _H_PAD), lambda i: (i, 0)),
        ),
        compiler_params=pltpu.CompilerParams(
            dimension_semantics=("parallel",),
        ),
    )(x_p, w1_p, w23_p, b_p)

    return out_p[:B, :1]


def init_params(key, state_dim, hidden_dim=10):
    """Deterministic init mirroring the PyTorch module:
    - weights: xavier_normal_ (gain=1.0)  -> N(0, 2/(fan_in+fan_out))
    - biases:  PyTorch nn.Linear default  -> U(-1/sqrt(fan_in), 1/sqrt(fan_in))
    Weights stored as (in_features, out_features).
    """
    dims = [(state_dim, hidden_dim), (hidden_dim, hidden_dim), (hidden_dim, 1)]
    params = []
    for fan_in, fan_out in dims:
        key, kw, kb = jax.random.split(key, 3)
        std = (2.0 / (fan_in + fan_out)) ** 0.5
        w = std * jax.random.normal(kw, (fan_in, fan_out), dtype=jnp.float32)
        bound = 1.0 / (fan_in ** 0.5)
        b = jax.random.uniform(kb, (fan_out,), dtype=jnp.float32,
                               minval=-bound, maxval=bound)
        params.append((w, b))
    return params


def _reference_forward(x, params):
    (w1, b1), (w2, b2), (w3, b3) = params
    h = jnp.maximum(x @ w1 + b1, 0.0)
    h = jnp.maximum(h @ w2 + b2, 0.0)
    return h @ w3 + b3


if __name__ == "__main__":
    key = jax.random.PRNGKey(0)
    k_params, k_x1, k_x2 = jax.random.split(key, 3)

    state_dim = 4      # CartPole observation dim
    hidden_dim = 10

    params = init_params(k_params, state_dim, hidden_dim)
    padded_params = prepare_params(params)          # done ONCE, outside the hot path
    padded_params = jax.block_until_ready(padded_params)

    # Small batch (single grid step).
    x_small = jax.random.normal(k_x1, (8, state_dim), dtype=jnp.float32)
    out_small = jax.block_until_ready(network_forward(x_small, padded_params))
    ref_small = _reference_forward(x_small, params)
    assert out_small.shape == (8, 1), out_small.shape
    assert jnp.allclose(out_small, ref_small, atol=1e-5, rtol=1e-5)

    # Larger batch (exercises batch tiling: grid > 1, parallel axis).
    x_big = jax.random.normal(k_x2, (1000, state_dim), dtype=jnp.float32)
    out_big = jax.block_until_ready(network_forward(x_big, padded_params))
    ref_big = _reference_forward(x_big, params)
    assert out_big.shape == (1000, 1), out_big.shape
    assert jnp.allclose(out_big, ref_big, atol=1e-4, rtol=1e-4)

    print("KERNEL_OK")
</pallas_src>

<mosaic_0001>
module attributes {stable_mosaic.version = 11 : i64} {
  func.func @_mlp_kernel(%arg0: i32, %arg1: memref<8x8xf32, #tpu.memory_space<vmem>>, %arg2: memref<8x128xf32, #tpu.memory_space<vmem>>, %arg3: memref<128x256xf32, #tpu.memory_space<vmem>>, %arg4: memref<8x128xf32, #tpu.memory_space<vmem>>, %arg5: memref<8x128xf32, #tpu.memory_space<vmem>>) attributes {dimension_semantics = [#tpu.dimension_semantics<parallel>], iteration_bounds = array<i64: 1>, scalar_prefetch = 0 : i64, scratch_operands = 0 : i64, tpu.core_type = #tpu.core_type<tc>, window_params = [{transform_indices = @transform_0, window_bounds = array<i64: 8, 8>}, {pipeline_mode = #tpu.pipeline_mode<synchronous>, transform_indices = @transform_1, window_bounds = array<i64: 8, 128>}, {pipeline_mode = #tpu.pipeline_mode<synchronous>, transform_indices = @transform_2, window_bounds = array<i64: 128, 256>}, {pipeline_mode = #tpu.pipeline_mode<synchronous>, transform_indices = @transform_3, window_bounds = array<i64: 8, 128>}, {transform_indices = @transform_4, window_bounds = array<i64: 8, 128>}]} {
    %c0 = arith.constant 0 : index
    %c0_0 = arith.constant 0 : index
    %0 = vector.load %arg1[%c0, %c0_0] : memref<8x8xf32, #tpu.memory_space<vmem>>, vector<8x8xf32>
    %c0_1 = arith.constant 0 : index
    %c0_2 = arith.constant 0 : index
    %1 = vector.load %arg2[%c0_1, %c0_2] : memref<8x128xf32, #tpu.memory_space<vmem>>, vector<8x128xf32>
    %cst = arith.constant dense<0.000000e+00> : vector<8x128xf32>
    %2 = tpu.matmul %0, %1, %cst {dimension_numbers = #tpu.dot_dimension_numbers<[1], [0], [0], [1], [0, 0, 1, 1], [], []>} : vector<8x8xf32>, vector<8x128xf32>, vector<8x128xf32> -> vector<8x128xf32>
    %c0_3 = arith.constant 0 : index
    %c0_4 = arith.constant 0 : index
    %3 = vector.load %arg4[%c0_3, %c0_4] : memref<8x128xf32, #tpu.memory_space<vmem>>, vector<1x128xf32>
    %4 = vector.broadcast %3 : vector<1x128xf32> to vector<8x128xf32>
    %5 = arith.addf %2, %4 : vector<8x128xf32>
    %cst_5 = arith.constant 0.000000e+00 : f32
    %6 = vector.broadcast %cst_5 : f32 to vector<8x128xf32>
    %7 = arith.maximumf %5, %6 : vector<8x128xf32>
    %c0_6 = arith.constant 0 : index
    %c0_7 = arith.constant 0 : index
    %8 = vector.load %arg3[%c0_6, %c0_7] : memref<128x256xf32, #tpu.memory_space<vmem>>, vector<128x128xf32>
    %cst_8 = arith.constant dense<0.000000e+00> : vector<8x128xf32>
    %9 = tpu.matmul %7, %8, %cst_8 {dimension_numbers = #tpu.dot_dimension_numbers<[1], [0], [0], [1], [0, 0, 1, 1], [], []>} : vector<8x128xf32>, vector<128x128xf32>, vector<8x128xf32> -> vector<8x128xf32>
    %c1 = arith.constant 1 : index
    %c0_9 = arith.constant 0 : index
    %10 = vector.load %arg4[%c1, %c0_9] : memref<8x128xf32, #tpu.memory_space<vmem>>, vector<1x128xf32>
    %11 = vector.broadcast %10 : vector<1x128xf32> to vector<8x128xf32>
    %12 = arith.addf %9, %11 : vector<8x128xf32>
    %cst_10 = arith.constant 0.000000e+00 : f32
    %13 = vector.broadcast %cst_10 : f32 to vector<8x128xf32>
    %14 = arith.maximumf %12, %13 : vector<8x128xf32>
    %c0_11 = arith.constant 0 : index
    %c128 = arith.constant 128 : index
    %15 = vector.load %arg3[%c0_11, %c128] : memref<128x256xf32, #tpu.memory_space<vmem>>, vector<128x128xf32>
    %cst_12 = arith.constant dense<0.000000e+00> : vector<8x128xf32>
    %16 = tpu.matmul %14, %15, %cst_12 {dimension_numbers = #tpu.dot_dimension_numbers<[1], [0], [0], [1], [0, 0, 1, 1], [], []>} : vector<8x128xf32>, vector<128x128xf32>, vector<8x128xf32> -> vector<8x128xf32>
    %c2 = arith.constant 2 : index
    %c0_13 = arith.constant 0 : index
    %17 = vector.load %arg4[%c2, %c0_13] : memref<8x128xf32, #tpu.memory_space<vmem>>, vector<1x128xf32>
    %18 = vector.broadcast %17 : vector<1x128xf32> to vector<8x128xf32>
    %19 = arith.addf %16, %18 : vector<8x128xf32>
    %c0_14 = arith.constant 0 : index
    %c0_15 = arith.constant 0 : index
    %20 = vector.load %arg5[%c0_14, %c0_15] : memref<8x128xf32, #tpu.memory_space<vmem>>, vector<8x128xf32>
    tpu.vector_store %arg5[%c0_14, %c0_15], %19 {strides = array<i32>} : memref<8x128xf32, #tpu.memory_space<vmem>>, vector<8x128xf32>,
    return
  }
  func.func @transform_0(%arg0: i32) -> (i32, i32) {
    %c0_i32 = arith.constant 0 : i32
    %c0_i32_0 = arith.constant 0 : i32
    return %arg0, %c0_i32 : i32, i32
  }
  func.func @transform_1(%arg0: i32) -> (i32, i32) {
    %c0_i32 = arith.constant 0 : i32
    %c0_i32_0 = arith.constant 0 : i32
    %c0_i32_1 = arith.constant 0 : i32
    return %c0_i32, %c0_i32_0 : i32, i32
  }
  func.func @transform_2(%arg0: i32) -> (i32, i32) {
    %c0_i32 = arith.constant 0 : i32
    %c0_i32_0 = arith.constant 0 : i32
    %c0_i32_1 = arith.constant 0 : i32
    return %c0_i32, %c0_i32_0 : i32, i32
  }
  func.func @transform_3(%arg0: i32) -> (i32, i32) {
    %c0_i32 = arith.constant 0 : i32
    %c0_i32_0 = arith.constant 0 : i32
    %c0_i32_1 = arith.constant 0 : i32
    return %c0_i32, %c0_i32_0 : i32, i32
  }
  func.func @transform_4(%arg0: i32) -> (i32, i32) {
    %c0_i32 = arith.constant 0 : i32
    %c0_i32_0 = arith.constant 0 : i32
    return %arg0, %c0_i32 : i32, i32
  }
}

</mosaic_0001>

<bundles_post_ra>
// kernel: network_forward.1
= control target key start
LH: loop header
LB: loop body
LE: loop exit
PB: predicated region body
PF: predicated region fallthrough
CT: control target
= control target key end

     0   :  { %9 = vsyncpa [#allocation3], 0  ;;  %s495_s15 = smov [#allocation2]   ;;  %s575_s0 = inlined_call_operand.vmem [shape: f32[8,8], index: 0, kind: input, shape index: {}]   ;;  %s576_s1 = inlined_call_operand.vmem [shape: f32[8,128], index: 1, kind: input, shape index: {}]   ;;  %s577_s2 = inlined_call_operand.hbm [shape: f32[128,256], index: 2, kind: input, shape index: {}]   ;;  %s578_s3 = inlined_call_operand.vmem [shape: f32[8,128], index: 3, kind: input, shape index: {}]   ;;  %s579_s4 = inlined_call_operand.vmem [shape: f32[8,128], index: 4, kind: output, shape index: {}]  }
   0x1   :  { %s19_s16 = sshll.u32 %s495_s15, 4  ;;  %s471_s19 = scalar_lea.hbm %s577_s2, 4096  ;;  %s20_s16 = int_to_ptr.vmem [resolvable:$true] %s19_s16 }
   0x2   :  { %p472_p0 = scmp.ne.s32.totalorder %s577_s2, %s471_s19  ;;  %p475_p1 = scmp.lt.u32.totalorder %s471_s19, %s577_s2 }
   0x4   :  { %p477_p2 = pnand %p475_p1, %p472_p0 }
   0x6   :  { %480 = shalt.err (!%p477_p2)
}
   0x7   :  { %s481_s24 = scalar_lea.vmem %s20_s16, 4096  ;;  %p486_p4 = scmp.lt.s32.totalorder %s20_s16, %s20_s16 }
   0x8   :  { %p482_p3 = scmp.ne.s32.totalorder %s20_s16, %s481_s24  ;;  %p487_p5 = scmp.lt.s32.totalorder %s481_s24, %s481_s24 }
   0xa   :  { %p488_p6 = por %p487_p5, %p486_p4 }
   0xc   :  { %p489_p7 = pnand %p488_p6, %p482_p3 }
   0xe   :  { %492 = shalt.err (!%p489_p7)
}
   0xf   :  { %s496_s25 = smov 256   ;;  %s497_s26 = smov 16  }
  0x10   :  { %25 = dma.hbm_to_vmem [thread:$0]  %s577_s2, 4096, %s20_s16, [#allocation3], %s496_s25, %s496_s25, %s497_s26  }
  0x11   :  { %493 = dma.done.wait [#allocation3], 4096  }
  0x12   :  { %494 = vsyncadd [#allocation3], 4294963200  ;;  %v498_v0 = vmov 0.0   ;;  %vm499_vm0 = vmmov 0   ;;  %v500_v1 = vmov 0.0|0.0   ;;  %vm38_vm1 = vcmask 64512  }
  0x13   :  { %342 = vmatprep.subr.mxu0 %v498_v0  ;;  %344 = vmatprep.mubr.msk.f32.mxu0 %vm499_vm0, %v498_v0  ;;  %v32_v2 = vld [vmem:[%s576_s1] sm:$0xff]  ;;  %v114_v5 = vld [vmem:[#allocation2 + $0x10] sm:$0xff]  ;;  %v205_v28 = vld [vmem:[#allocation2 + $0x8] sm:$0xff] }
  0x14   :  { %417 = vmatprep.subr.bf16.mxu1 %v500_v1  ;;  %379 = vmatprep.mubr.msk.f32.mxu1 %vm499_vm0, %v498_v0  ;;  %v31_v3 = vld [vmem:[%s575_s0] sm:$0xff]  ;;  %v116_v7 = vld [vmem:[#allocation2 + $0x30] sm:$0xff]  ;;  %v206_v29 = vld [vmem:[#allocation2 + $0x18] sm:$0xff] }
  0x15   :  { %v113_v4 = vld [vmem:[#allocation2] sm:$0xff]  ;;  %343 = vmatpush3.msra.mxu0 %v32_v2  ;;  %v118_v11 = vld [vmem:[#allocation2 + $0x50] sm:$0xff]  ;;  %v207_v30 = vld [vmem:[#allocation2 + $0x28] sm:$0xff]  ;;  %v442_v31 = vpack.c.bf16 %v206_v29, %v205_v28 }
  0x16   :  { %v115_v6 = vld [vmem:[#allocation2 + $0x20] sm:$0xff]  ;;  %345 = vmatmul.mubr.msk.f32.vlgmr.msra.gmra.mrb[0].mxu0 %vm38_vm1, %v31_v3  ;;  %v418_v8 = vpack.c.bf16 %v114_v5, %v113_v4  ;;  %441 = vmatprep.subr.bf16.mxu0 %v500_v1  ;;  %v120_v14 = vld [vmem:[#allocation2 + $0x70] sm:$0xff]  ;;  %v208_v32 = vld [vmem:[#allocation2 + $0x38] sm:$0xff] }
  0x17   :  { %414 = vmatprep.mubr.msk.f32.mxu0 %vm499_vm0, %v498_v0  ;;  %v421_v9 = vpack.c.bf16 %v116_v7, %v115_v6  ;;  %v117_v10 = vld [vmem:[#allocation2 + $0x40] sm:$0xff]  ;;  %v122_v17 = vld [vmem:[#allocation2 + $0x90] sm:$0xff]  ;;  %443 = vmatpush3.bf16.msra.mxu0 %v442_v31  ;;  %v445_v33 = vpack.c.bf16 %v208_v32, %v207_v30  ;;  %v209_v34 = vld [vmem:[#allocation2 + $0x48] sm:$0xff] }
  0x18   :  { %419 = vmatpush3.bf16.msra.mxu1 %v418_v8  ;;  %v424_v12 = vpack.c.bf16 %v118_v11, %v117_v10  ;;  %v119_v13 = vld [vmem:[#allocation2 + $0x60] sm:$0xff]  ;;  %v124_v20 = vld [vmem:[#allocation2 + $0xb0] sm:$0xff]  ;;  %444 = vmatprep.subr.bf16.mxu0 %v500_v1  ;;  %v210_v35 = vld [vmem:[#allocation2 + $0x58] sm:$0xff] }
  0x19   :  { %420 = vmatprep.subr.bf16.mxu1 %v500_v1  ;;  %v427_v15 = vpack.c.bf16 %v120_v14, %v119_v13  ;;  %v121_v16 = vld [vmem:[#allocation2 + $0x80] sm:$0xff]  ;;  %v126_v23 = vld [vmem:[#allocation2 + $0xd0] sm:$0xff]  ;;  %v448_v36 = vpack.c.bf16 %v210_v35, %v209_v34  ;;  %v211_v37 = vld [vmem:[#allocation2 + $0x68] sm:$0xff] }
  0x1a   :  { %v430_v18 = vpack.c.bf16 %v122_v17, %v121_v16  ;;  %v123_v19 = vld [vmem:[#allocation2 + $0xa0] sm:$0xff]  ;;  %v128_v26 = vld [vmem:[#allocation2 + $0xf0] sm:$0xff]  ;;  %v212_v38 = vld [vmem:[#allocation2 + $0x78] sm:$0xff] }
  0x1b   :  { %v433_v21 = vpack.c.bf16 %v124_v20, %v123_v19  ;;  %v125_v22 = vld [vmem:[#allocation2 + $0xc0] sm:$0xff]  ;;  %446 = vmatpush3.bf16.msra.mxu0 %v445_v33  ;;  %v451_v39 = vpack.c.bf16 %v212_v38, %v211_v37  ;;  %v213_v40 = vld [vmem:[#allocation2 + $0x88] sm:$0xff]  ;;  %v214_v41 = vld [vmem:[#allocation2 + $0x98] sm:$0xff] }
  0x1c   :  { %422 = vmatpush3.bf16.msra.mxu1 %v421_v9  ;;  %v436_v24 = vpack.c.bf16 %v126_v23, %v125_v22  ;;  %v127_v25 = vld [vmem:[#allocation2 + $0xe0] sm:$0xff]  ;;  %447 = vmatprep.subr.bf16.mxu0 %v500_v1  ;;  %v454_v42 = vpack.c.bf16 %v214_v41, %v213_v40  ;;  %v215_v43 = vld [vmem:[#allocation2 + $0xa8] sm:$0xff]  ;;  %v216_v44 = vld [vmem:[#allocation2 + $0xb8] sm:$0xff] }
  0x1d   :  { %423 = vmatprep.subr.bf16.mxu1 %v500_v1  ;;  %v439_v27 = vpack.c.bf16 %v128_v26, %v127_v25  ;;  %v457_v45 = vpack.c.bf16 %v216_v44, %v215_v43  ;;  %v217_v46 = vld [vmem:[#allocation2 + $0xc8] sm:$0xff]  ;;  %v218_v47 = vld [vmem:[#allocation2 + $0xd8] sm:$0xff]  ;;  %v302_v49 = vld [vmem:[%s578_s3] ss:$0 sm:$0xff] }
  0x1e   :  { %v460_v48 = vpack.c.bf16 %v218_v47, %v217_v46  ;;  %v219_v54 = vld [vmem:[#allocation2 + $0xe8] sm:$0xff]  ;;  %v220_v55 = vld [vmem:[#allocation2 + $0xf8] sm:$0xff]  ;;  %v304_v57 = vld [vmem:[%s578_s3 + $0x1] ss:$0 sm:$0xff] }
  0x1f   :  { %449 = vmatpush3.bf16.msra.mxu0 %v448_v36  ;;  %v463_v56 = vpack.c.bf16 %v220_v55, %v219_v54  ;;  %v305_v62 = vld [vmem:[%s578_s3 + $0x2] ss:$0 sm:$0xff] }
  0x20   :  { %425 = vmatpush3.bf16.msra.mxu1 %v424_v12  ;;  %450 = vmatprep.subr.bf16.mxu0 %v500_v1 }
  0x21   :  { %426 = vmatprep.subr.bf16.mxu1 %v500_v1 }
  0x23   :  { %452 = vmatpush3.bf16.msra.mxu0 %v451_v39 }
  0x24   :  { %428 = vmatpush3.bf16.msra.mxu1 %v427_v15  ;;  %453 = vmatprep.subr.bf16.mxu0 %v500_v1 }
  0x25   :  { %429 = vmatprep.subr.bf16.mxu1 %v500_v1 }
  0x27   :  { %455 = vmatpush3.bf16.msra.mxu0 %v454_v42 }
  0x28   :  { %431 = vmatpush3.bf16.msra.mxu1 %v430_v18  ;;  %456 = vmatprep.subr.bf16.mxu0 %v500_v1 }
  0x29   :  { %432 = vmatprep.subr.bf16.mxu1 %v500_v1 }
  0x2b   :  { %458 = vmatpush3.bf16.msra.mxu0 %v457_v45 }
  0x2c   :  { %434 = vmatpush3.bf16.msra.mxu1 %v433_v21  ;;  %459 = vmatprep.subr.bf16.mxu0 %v500_v1 }
  0x2d   :  { %435 = vmatprep.subr.bf16.mxu1 %v500_v1 }
  0x2f   :  { %461 = vmatpush3.bf16.msra.mxu0 %v460_v48 }
  0x30   :  { %437 = vmatpush3.bf16.msra.mxu1 %v436_v24  ;;  %462 = vmatprep.subr.bf16.mxu0 %v500_v1 }
  0x31   :  { %438 = vmatprep.subr.bf16.mxu1 %v500_v1 }
  0x33   :  { %464 = vmatpush3.bf16.msra.mxu0 %v463_v56 }
  0x34   :  { %440 = vmatpush3.bf16.msra.mxu1 %v439_v27 }
  0xe9   :  { %v108_v50 = vpop.f32.mrb[0].mxu0 }
  0xea   :  { %v109_v51 = vadd.f32 %v302_v49, %v108_v50  ;;  %v346_v52 = vpop.f32.mrb[1].mxu0 }
  0xec   :  { %v112_v53 = vmax.f32 %v109_v51, 0.0 }
  0xee   :  { %380 = vmatmul.mubr.f32.vlgmr.msra.gmra.mrb[0].mxu1 %v112_v53 }
 0x1c1   :  { %v200_v58 = vpop.f32.mrb[0].mxu1 }
 0x1c2   :  { %v201_v59 = vadd.f32 %v304_v57, %v200_v58  ;;  %v381_v60 = vpop.f32.mrb[1].mxu1 }
 0x1c4   :  { %v204_v61 = vmax.f32 %v201_v59, 0.0 }
 0x1c6   :  { %415 = vmatmul.mubr.f32.vlgmr.msra.gmra.mrb[2].mxu0 %v204_v61 }
 0x299   :  { %v292_v63 = vpop.f32.mrb[2].mxu0 }
 0x29a   :  { %v293_v0 = vadd.f32 %v305_v62, %v292_v63  ;;  %v416_v1 = vpop.f32.mrb[3].mxu0 }
 0x29c   :  { %296 = vst [vmem:[%s579_s4] sm:$0xff] %v293_v0 }
 0x29d   :  { %301 = vsyncpa [#allocation3], 1 }

</bundles_post_ra>
